<compile_context>
chip_gen: v7x
topology: tpu7x:2x2x1
jax: 0.10.0
libtpu: 0.0.40
codegen_flags: <defaults>
</compile_context>

<pallas_src>
import functools
import math

import jax
import jax.numpy as jnp
from jax import lax
from jax.experimental import pallas as pl
from jax.experimental.pallas import tpu as pltpu

TOL = 1e-7
DEFAULT_BDY = {'val': None, 'diff_fn': None}

LANE_TARGET = 4096                 # target lanes per block for the flat (C, B*N) path
DIRECT_MIN_N = 128                 # at/above this N run straight off (B, C, N)
VMEM_LIMIT_BYTES = 32 * 1024 * 1024  # explicit scoped-VMEM budget (safe on v5e/v6e/v7x)

_COMPILER_PARAMS = pltpu.CompilerParams(
    dimension_semantics=("parallel",),     # independent tiles -> megacore on v7x
    vmem_limit_bytes=VMEM_LIMIT_BYTES,
)


# ---------------------------------------------------------------------------
# In-kernel helpers
# ---------------------------------------------------------------------------
def _col_in_batch(l, n):
    """Per-lane column index within a batch, as a (1, L) int32 row (l, n static)."""
    col = lax.broadcasted_iota(jnp.int32, (1, l), 1)
    if l == n:                      # one batch per block: no modulo needed
        return col
    if n & (n - 1) == 0:            # power-of-two batch length: cheap AND
        return jnp.bitwise_and(col, n - 1)
    return col % n


def _conv_taps(x, w0, w1, w2, mask0, maskN):
    """Zero-padded 'same' K=3 cross-correlation on a (C, L) slab whose lanes are
    whole batches laid end to end.  mask0/maskN flag each batch's first/last column.
    Three small MXU dots accumulated in f32 — no (3C, L) concat copy."""
    l = x.shape[1]
    xl = jnp.where(mask0, 0.0, pltpu.roll(x, shift=1, axis=1))       # x[:, m-1]
    xr = jnp.where(maskN, 0.0, pltpu.roll(x, shift=l - 1, axis=1))   # x[:, m+1]
    acc = jnp.dot(w1, x, preferred_element_type=jnp.float32)
    acc = acc + jnp.dot(w0, xl, preferred_element_type=jnp.float32)
    acc = acc + jnp.dot(w2, xr, preferred_element_type=jnp.float32)
    return acc


# ---------------------------------------------------------------------------
# Kernel A: plain layer application (both-None boundary path).
# ---------------------------------------------------------------------------
def _conv_kernel(x_ref, w0_ref, w1_ref, w2_ref, out_ref, *, n):
    x = x_ref[...].astype(jnp.float32)
    col = _col_in_batch(x.shape[1], n)
    mask0 = col == 0
    maskN = col == (n - 1)
    out = _conv_taps(x, w0_ref[...], w1_ref[...], w2_ref[...], mask0, maskN)
    out_ref[...] = out.astype(out_ref.dtype)


# ---------------------------------------------------------------------------
# Kernel B: fused Gaussian-elimination Dirichlet correction.
#   p_ref (SMEM f32[4]): [1/KNN, 1/tilde_K00, left_val, right_val]
# One conv, two O(1) column patches, boundary writes — one launch per tile.
# ---------------------------------------------------------------------------
def _dir_kernel(p_ref, x_ref, w0_ref, w1_ref, w2_ref, out_ref, *, n):
    inv_knn = p_ref[0]
    inv_tk00 = p_ref[1]
    left_val = p_ref[2]
    right_val = p_ref[3]

    x = x_ref[...].astype(jnp.float32)            # (C, L)
    w0 = w0_ref[...]
    w1 = w1_ref[...]
    w2 = w2_ref[...]
    l = x.shape[1]
    col = _col_in_batch(l, n)                     # masks built once
    mask0 = col == 0
    maskN = col == (n - 1)

    kx = _conv_taps(x, w0, w1, w2, mask0, maskN)  # conv(x), computed once

    # Boundary elimination deltas.  With zero padding, K=3, N >= 3: K0N = KN0 = 0, so
    #   d0 = x[:,0]   - Kx[:,0]   * (1/tilde_K00)   (perturbs only output col 1, tap 0)
    #   dN = x[:,N-1] - Kx[:,N-1] * (1/KNN)         (perturbs only output col N-2, tap 2)
    # `u` holds the correct delta at each boundary column; elsewhere it is masked away.
    scale = jnp.where(mask0, inv_tk00, inv_knn)   # scalar select — no full-width divide
    u = x - scale * kx
    d0r = jnp.where(col == 1, pltpu.roll(u, shift=1, axis=1), 0.0)            # -> col 1
    dNr = jnp.where(col == (n - 2), pltpu.roll(u, shift=l - 1, axis=1), 0.0)  # -> col N-2

    out = (kx
           + jnp.dot(w0, d0r, preferred_element_type=jnp.float32)
           + jnp.dot(w2, dNr, preferred_element_type=jnp.float32))
    out = jnp.where(mask0, left_val, out)
    out = jnp.where(maskN, right_val, out)
    out_ref[...] = out.astype(out_ref.dtype)


# ---------------------------------------------------------------------------
# Wrapper-side tiling helpers
# ---------------------------------------------------------------------------
def _batches_per_block(b, n, target=LANE_TARGET):
    """Batches per lane-block for the flat (C, B*N) layout: block lanes are either the
    full extent or a batch-aligned multiple of 128 near `target` lanes."""
    if b * n <= target:
        return b
    step = 128 // math.gcd(n, 128)          # smallest nb with (nb * n) % 128 == 0
    nb = max(step, (target // (n * step)) * step)
    return b if nb >= b else nb


# ---------------------------------------------------------------------------
# JAX/Pallas port of dirkernelcorrection1d.
# ---------------------------------------------------------------------------
class DirKernelCorrection1D:
    def __init__(self, weight, tol=TOL):
        # weight: (Cout, Cin, K) — PyTorch Conv1d OIW layout.
        cout, cin, k = weight.shape
        assert k == 3 and cout == cin, \
            "this Pallas port assumes a C->C, kernel_size=3, padding=1 Conv1d"
        w = jnp.asarray(weight, jnp.float32)
        self.c = int(cout)
        self.tol = tol
        # Per-tap weights (constant index_maps keep them VMEM-resident across steps).
        self._w0 = w[:, :, 0]     # acts on x[m-1]
        self._w1 = w[:, :, 1]     # acts on x[m]
        self._w2 = w[:, :, 2]     # acts on x[m+1]
        # Analytic boundary probes (zero padding, K=3, N >= 3):
        #   K00 = KNN = sum_ci w[0,ci,1],  K0N = KN0 = 0  =>  tilde_K00 = K00.
        k_probe = jnp.sum(w[0, :, 1])
        k_probe = jnp.where(jnp.abs(k_probe) < tol, tol, k_probe)
        inv = 1.0 / k_probe                      # scalar reciprocal, computed once
        self._inv_knn = inv
        self._inv_tk00 = inv

    # ---- pallas_call plumbing ------------------------------------------------
    def _apply_direct(self, kernel, params, x):
        """N >= 128: grid over batches, no wrapper transposes."""
        b, c, n = x.shape
        x_spec = pl.BlockSpec((None, c, n), lambda i: (i, 0, 0))
        w_spec = pl.BlockSpec((c, c), lambda i: (0, 0))
        out_spec = pl.BlockSpec((None, c, n), lambda i: (i, 0, 0))
        in_specs = [x_spec, w_spec, w_spec, w_spec]
        args = [x, self._w0, self._w1, self._w2]
        if params is not None:
            in_specs = [pl.BlockSpec(memory_space=pltpu.MemorySpace.SMEM)] + in_specs
            args = [params] + args
        return pl.pallas_call(
            functools.partial(kernel, n=n),
            grid=(b,),
            in_specs=in_specs,
            out_specs=out_spec,
            out_shape=jax.ShapeDtypeStruct((b, c, n), x.dtype),
            compiler_params=_COMPILER_PARAMS,
        )(*args)

    def _apply_flat(self, kernel, params, x):
        """Small N: lane-dense (C, B*N) slab, batch-aligned lane tiles."""
        b, c, n = x.shape
        xf = jnp.transpose(x, (1, 0, 2)).reshape(c, b * n)
        nb = _batches_per_block(b, n)
        t = nb * n
        x_spec = pl.BlockSpec((c, t), lambda i: (0, i))
        w_spec = pl.BlockSpec((c, c), lambda i: (0, 0))
        out_spec = pl.BlockSpec((c, t), lambda i: (0, i))
        in_specs = [x_spec, w_spec, w_spec, w_spec]
        args = [xf, self._w0, self._w1, self._w2]
        if params is not None:
            in_specs = [pl.BlockSpec(memory_space=pltpu.MemorySpace.SMEM)] + in_specs
            args = [params] + args
        yf = pl.pallas_call(
            functools.partial(kernel, n=n),
            grid=(pl.cdiv(b, nb),),
            in_specs=in_specs,
            out_specs=out_spec,
            out_shape=jax.ShapeDtypeStruct((c, b * n), x.dtype),
            compiler_params=_COMPILER_PARAMS,
        )(*args)
        return jnp.transpose(yf.reshape(c, b, n), (1, 0, 2))

    def _apply(self, kernel, params, x):
        b, c, n = x.shape
        assert c == self.c
        if n >= DIRECT_MIN_N:
            return self._apply_direct(kernel, params, x)
        return self._apply_flat(kernel, params, x)

    # ---- public API ----------------------------------------------------------
    def layer(self, x):
        return self._apply(_conv_kernel, None, x)

    def __call__(self, x, left=DEFAULT_BDY, right=DEFAULT_BDY):
        if left['val'] is None and right['val'] is None:
            return self.layer(x)
        if left['val'] is None or right['val'] is None:
            # TODO(synk): mixed one-sided None boundaries are not supported — the
            # reference PyTorch forward errors on `T[..., 0] = None` anyway.
            raise NotImplementedError("both boundary values must be given (or both None)")
        n = x.shape[-1]
        if n < 3:
            # TODO(synk): N < 3 needs the general (coupled) elimination path.
            raise NotImplementedError("Pallas dirkernelcorrection1d requires N >= 3")
        params = jnp.stack([
            self._inv_knn, self._inv_tk00,
            jnp.asarray(left['val'], jnp.float32),
            jnp.asarray(right['val'], jnp.float32),
        ]).astype(jnp.float32)
        return self._apply(_dir_kernel, params, x)


# ---------------------------------------------------------------------------
# Pure-JAX reference (mirrors the PyTorch code) for correctness checking.
# ---------------------------------------------------------------------------
def _ref_conv(x, weight):
    pad = weight.shape[-1] // 2
    return lax.conv_general_dilated(
        x, weight, window_strides=(1,), padding=[(pad, pad)],
        dimension_numbers=('NCH', 'OIH', 'NCH'),
        precision=lax.Precision.HIGHEST)


def _ref_forward(x, weight, left_val, right_val, tol=TOL):
    layer = lambda z: _ref_conv(z, weight)
    e1 = jnp.zeros_like(x).at[:, :, 0].set(1.0)
    eN = jnp.zeros_like(x).at[:, :, -1].set(1.0)
    K00 = layer(e1)[0, 0, 0]
    KN0 = layer(e1)[0, 0, -1]
    K00 = jnp.where(jnp.abs(K00) < tol, tol, K00)
    KNN = layer(eN)[0, 0, -1]
    K0N = layer(eN)[0, 0, 0]
    KNN = jnp.where(jnp.abs(KNN) < tol, tol, KNN)
    Kx = layer(x)
    tilde_K00 = K00 - KN0 * K0N / KNN
    tilde_K00 = jnp.where(jnp.abs(tilde_K00) < tol, tol, tilde_K00)
    new_first = 2 * x[:, :, 0] - 1 / tilde_K00 * (
        Kx[:, :, 0] - Kx[:, :, -1] * K0N / KNN + K0N * x[:, :, -1])
    T2_left = x.at[:, :, 0].set(new_first)
    Ky = layer(T2_left)
    new_last = 2 * T2_left[:, :, -1] - Ky[:, :, -1] / KNN
    T2_right = T2_left.at[:, :, -1].set(new_last)
    T = layer(T2_right)
    return T.at[..., 0].set(left_val).at[..., -1].set(right_val)


if __name__ == "__main__":
    key = jax.random.PRNGKey(0)
    kx1, kx2, kw = jax.random.split(key, 3)
    B, C, N, K = 2, 4, 16, 3

    x = jax.random.normal(kx1, (B, C, N), dtype=jnp.float32)
    weight = jax.random.normal(kw, (C, C, K), dtype=jnp.float32) / jnp.sqrt(C * K)

    left = {'val': 0.5, 'diff_fn': None}
    right = {'val': -0.25, 'diff_fn': None}

    module = DirKernelCorrection1D(weight)

    # 1) Small-N flat (C, B*N) lane-tiled path, Dirichlet correction.
    out = jax.block_until_ready(module(x, left=left, right=right))
    ref = _ref_forward(x, weight, left['val'], right['val'])
    assert out.shape == ref.shape and out.dtype == ref.dtype
    assert jnp.allclose(out, ref, rtol=1e-4, atol=1e-4), float(
        jnp.max(jnp.abs(out - ref)))

    # 2) Both-None boundary path -> plain layer application.
    out_plain = jax.block_until_ready(
        module(x, left={'val': None, 'diff_fn': None},
               right={'val': None, 'diff_fn': None}))
    assert jnp.allclose(out_plain, _ref_conv(x, weight), rtol=1e-4, atol=1e-4)

    # 3) Large-N direct (B, C, N) path: parallel batch grid, no wrapper transposes.
    N2 = 256
    x2 = jax.random.normal(kx2, (B, C, N2), dtype=jnp.float32)
    out2 = jax.block_until_ready(module(x2, left=left, right=right))
    ref2 = _ref_forward(x2, weight, left['val'], right['val'])
    assert jnp.allclose(out2, ref2, rtol=1e-4, atol=1e-4), float(
        jnp.max(jnp.abs(out2 - ref2)))

    print("KERNEL_OK")
</pallas_src>

<mosaic_0001>
module attributes {stable_mosaic.version = 11 : i64} {
  func.func @_dir_kernel(%arg0: i32, %arg1: memref<4xf32, #tpu.memory_space<smem>>, %arg2: memref<4x32xf32, #tpu.memory_space<vmem>>, %arg3: memref<4x4xf32, #tpu.memory_space<vmem>>, %arg4: memref<4x4xf32, #tpu.memory_space<vmem>>, %arg5: memref<4x4xf32, #tpu.memory_space<vmem>>, %arg6: memref<4x32xf32, #tpu.memory_space<vmem>>) attributes {dimension_semantics = [#tpu.dimension_semantics<parallel>], iteration_bounds = array<i64: 1>, scalar_prefetch = 0 : i64, scratch_operands = 0 : i64, tpu.core_type = #tpu.core_type<tc>, window_params = [{transform_indices = @transform_0, window_bounds = array<i64: 4>}, {transform_indices = @transform_1, window_bounds = array<i64: 4, 32>}, {pipeline_mode = #tpu.pipeline_mode<synchronous>, transform_indices = @transform_2, window_bounds = array<i64: 4, 4>}, {pipeline_mode = #tpu.pipeline_mode<synchronous>, transform_indices = @transform_3, window_bounds = array<i64: 4, 4>}, {pipeline_mode = #tpu.pipeline_mode<synchronous>, transform_indices = @transform_4, window_bounds = array<i64: 4, 4>}, {transform_indices = @transform_5, window_bounds = array<i64: 4, 32>}]} {
    %c0 = arith.constant 0 : index
    %0 = memref.load %arg1[%c0] : memref<4xf32, #tpu.memory_space<smem>>
    %c1 = arith.constant 1 : index
    %1 = memref.load %arg1[%c1] : memref<4xf32, #tpu.memory_space<smem>>
    %c2 = arith.constant 2 : index
    %2 = memref.load %arg1[%c2] : memref<4xf32, #tpu.memory_space<smem>>
    %c3 = arith.constant 3 : index
    %3 = memref.load %arg1[%c3] : memref<4xf32, #tpu.memory_space<smem>>
    %c0_0 = arith.constant 0 : index
    %c0_1 = arith.constant 0 : index
    %4 = vector.load %arg2[%c0_0, %c0_1] : memref<4x32xf32, #tpu.memory_space<vmem>>, vector<4x32xf32>
    %c0_2 = arith.constant 0 : index
    %c0_3 = arith.constant 0 : index
    %5 = vector.load %arg3[%c0_2, %c0_3] : memref<4x4xf32, #tpu.memory_space<vmem>>, vector<4x4xf32>
    %c0_4 = arith.constant 0 : index
    %c0_5 = arith.constant 0 : index
    %6 = vector.load %arg4[%c0_4, %c0_5] : memref<4x4xf32, #tpu.memory_space<vmem>>, vector<4x4xf32>
    %c0_6 = arith.constant 0 : index
    %c0_7 = arith.constant 0 : index
    %7 = vector.load %arg5[%c0_6, %c0_7] : memref<4x4xf32, #tpu.memory_space<vmem>>, vector<4x4xf32>
    %8 = tpu.iota {dimensions = array<i32: 1>} : vector<1x32xi32>
    %c15_i32 = arith.constant 15 : i32
    %9 = vector.broadcast %c15_i32 : i32 to vector<1x32xi32>
    %10 = arith.andi %8, %9 : vector<1x32xi32>
    %c0_i32 = arith.constant 0 : i32
    %11 = vector.broadcast %c0_i32 : i32 to vector<1x32xi32>
    %12 = arith.cmpi eq, %10, %11 : vector<1x32xi32>
    %c15_i32_8 = arith.constant 15 : i32
    %13 = vector.broadcast %c15_i32_8 : i32 to vector<1x32xi32>
    %14 = arith.cmpi eq, %10, %13 : vector<1x32xi32>
    %c1_i32 = arith.constant 1 : i32
    %15 = tpu.dynamic_rotate %4 by %c1_i32 dim 1 : vector<4x32xf32>, i32 -> vector<4x32xf32>
    %cst = arith.constant 0.000000e+00 : f32
    %16 = vector.shape_cast %12 : vector<1x32xi1> to vector<1x32xi1>
    %17 = vector.broadcast %16 : vector<1x32xi1> to vector<4x32xi1>
    %18 = vector.broadcast %cst : f32 to vector<4x32xf32>
    %19 = arith.select %17, %18, %15 : vector<4x32xi1>, vector<4x32xf32>
    %c31_i32 = arith.constant 31 : i32
    %20 = tpu.dynamic_rotate %4 by %c31_i32 dim 1 : vector<4x32xf32>, i32 -> vector<4x32xf32>
    %cst_9 = arith.constant 0.000000e+00 : f32
    %21 = vector.shape_cast %14 : vector<1x32xi1> to vector<1x32xi1>
    %22 = vector.broadcast %21 : vector<1x32xi1> to vector<4x32xi1>
    %23 = vector.broadcast %cst_9 : f32 to vector<4x32xf32>
    %24 = arith.select %22, %23, %20 : vector<4x32xi1>, vector<4x32xf32>
    %cst_10 = arith.constant dense<0.000000e+00> : vector<4x32xf32>
    %25 = tpu.matmul %6, %4, %cst_10 {dimension_numbers = #tpu.dot_dimension_numbers<[1], [0], [0], [1], [0, 0, 1, 1], [], []>} : vector<4x4xf32>, vector<4x32xf32>, vector<4x32xf32> -> vector<4x32xf32>
    %cst_11 = arith.constant dense<0.000000e+00> : vector<4x32xf32>
    %26 = tpu.matmul %5, %19, %cst_11 {dimension_numbers = #tpu.dot_dimension_numbers<[1], [0], [0], [1], [0, 0, 1, 1], [], []>} : vector<4x4xf32>, vector<4x32xf32>, vector<4x32xf32> -> vector<4x32xf32>
    %27 = arith.addf %25, %26 : vector<4x32xf32>
    %cst_12 = arith.constant dense<0.000000e+00> : vector<4x32xf32>
    %28 = tpu.matmul %7, %24, %cst_12 {dimension_numbers = #tpu.dot_dimension_numbers<[1], [0], [0], [1], [0, 0, 1, 1], [], []>} : vector<4x4xf32>, vector<4x32xf32>, vector<4x32xf32> -> vector<4x32xf32>
    %29 = arith.addf %27, %28 : vector<4x32xf32>
    %30 = vector.broadcast %1 : f32 to vector<1x32xf32>
    %31 = vector.broadcast %0 : f32 to vector<1x32xf32>
    %32 = arith.select %12, %30, %31 : vector<1x32xi1>, vector<1x32xf32>
    %33 = vector.broadcast %32 : vector<1x32xf32> to vector<4x32xf32>
    %34 = arith.mulf %33, %29 : vector<4x32xf32>
    %35 = arith.subf %4, %34 : vector<4x32xf32>
    %c1_i32_13 = arith.constant 1 : i32
    %36 = vector.broadcast %c1_i32_13 : i32 to vector<1x32xi32>
    %37 = arith.cmpi eq, %10, %36 : vector<1x32xi32>
    %c1_i32_14 = arith.constant 1 : i32
    %38 = tpu.dynamic_rotate %35 by %c1_i32_14 dim 1 : vector<4x32xf32>, i32 -> vector<4x32xf32>
    %cst_15 = arith.constant 0.000000e+00 : f32
    %39 = vector.shape_cast %37 : vector<1x32xi1> to vector<1x32xi1>
    %40 = vector.broadcast %39 : vector<1x32xi1> to vector<4x32xi1>
    %41 = vector.broadcast %cst_15 : f32 to vector<4x32xf32>
    %42 = arith.select %40, %38, %41 : vector<4x32xi1>, vector<4x32xf32>
    %c14_i32 = arith.constant 14 : i32
    %43 = vector.broadcast %c14_i32 : i32 to vector<1x32xi32>
    %44 = arith.cmpi eq, %10, %43 : vector<1x32xi32>
    %c31_i32_16 = arith.constant 31 : i32
    %45 = tpu.dynamic_rotate %35 by %c31_i32_16 dim 1 : vector<4x32xf32>, i32 -> vector<4x32xf32>
    %cst_17 = arith.constant 0.000000e+00 : f32
    %46 = vector.shape_cast %44 : vector<1x32xi1> to vector<1x32xi1>
    %47 = vector.broadcast %46 : vector<1x32xi1> to vector<4x32xi1>
    %48 = vector.broadcast %cst_17 : f32 to vector<4x32xf32>
    %49 = arith.select %47, %45, %48 : vector<4x32xi1>, vector<4x32xf32>
    %cst_18 = arith.constant dense<0.000000e+00> : vector<4x32xf32>
    %50 = tpu.matmul %5, %42, %cst_18 {dimension_numbers = #tpu.dot_dimension_numbers<[1], [0], [0], [1], [0, 0, 1, 1], [], []>} : vector<4x4xf32>, vector<4x32xf32>, vector<4x32xf32> -> vector<4x32xf32>
    %51 = arith.addf %29, %50 : vector<4x32xf32>
    %cst_19 = arith.constant dense<0.000000e+00> : vector<4x32xf32>
    %52 = tpu.matmul %7, %49, %cst_19 {dimension_numbers = #tpu.dot_dimension_numbers<[1], [0], [0], [1], [0, 0, 1, 1], [], []>} : vector<4x4xf32>, vector<4x32xf32>, vector<4x32xf32> -> vector<4x32xf32>
    %53 = arith.addf %51, %52 : vector<4x32xf32>
    %54 = vector.shape_cast %12 : vector<1x32xi1> to vector<1x32xi1>
    %55 = vector.broadcast %54 : vector<1x32xi1> to vector<4x32xi1>
    %56 = vector.broadcast %2 : f32 to vector<4x32xf32>
    %57 = arith.select %55, %56, %53 : vector<4x32xi1>, vector<4x32xf32>
    %58 = vector.shape_cast %14 : vector<1x32xi1> to vector<1x32xi1>
    %59 = vector.broadcast %58 : vector<1x32xi1> to vector<4x32xi1>
    %60 = vector.broadcast %3 : f32 to vector<4x32xf32>
    %61 = arith.select %59, %60, %57 : vector<4x32xi1>, vector<4x32xf32>
    %c0_20 = arith.constant 0 : index
    %c0_21 = arith.constant 0 : index
    %62 = vector.load %arg6[%c0_20, %c0_21] : memref<4x32xf32, #tpu.memory_space<vmem>>, vector<4x32xf32>
    tpu.vector_store %arg6[%c0_20, %c0_21], %61 {strides = array<i32>} : memref<4x32xf32, #tpu.memory_space<vmem>>, vector<4x32xf32>,
    return
  }
  func.func @transform_0(%arg0: i32) -> i32 {
    %c0_i32 = arith.constant 0 : i32
    %c0_i32_0 = arith.constant 0 : i32
    return %c0_i32 : i32
  }
  func.func @transform_1(%arg0: i32) -> (i32, i32) {
    %c0_i32 = arith.constant 0 : i32
    %c0_i32_0 = arith.constant 0 : i32
    return %c0_i32, %arg0 : i32, i32
  }
  func.func @transform_2(%arg0: i32) -> (i32, i32) {
    %c0_i32 = arith.constant 0 : i32
    %c0_i32_0 = arith.constant 0 : i32
    %c0_i32_1 = arith.constant 0 : i32
    return %c0_i32, %c0_i32_0 : i32, i32
  }
  func.func @transform_3(%arg0: i32) -> (i32, i32) {
    %c0_i32 = arith.constant 0 : i32
    %c0_i32_0 = arith.constant 0 : i32
    %c0_i32_1 = arith.constant 0 : i32
    return %c0_i32, %c0_i32_0 : i32, i32
  }
  func.func @transform_4(%arg0: i32) -> (i32, i32) {
    %c0_i32 = arith.constant 0 : i32
    %c0_i32_0 = arith.constant 0 : i32
    %c0_i32_1 = arith.constant 0 : i32
    return %c0_i32, %c0_i32_0 : i32, i32
  }
  func.func @transform_5(%arg0: i32) -> (i32, i32) {
    %c0_i32 = arith.constant 0 : i32
    %c0_i32_0 = arith.constant 0 : i32
    return %c0_i32, %arg0 : i32, i32
  }
}

</mosaic_0001>

<bundles_post_ra>
// kernel: tpu_custom_call.1
= control target key start
LH: loop header
LB: loop body
LE: loop exit
PB: predicated region body
PF: predicated region fallthrough
CT: control target
= control target key end

     0   :  { %10 = vsyncpa [#allocation5], 0  ;;  %s763_s0 = inlined_call_operand.hbm [shape: f32[4], index: 0, kind: input, shape index: {}]   ;;  %s764_s1 = inlined_call_operand.hbm [shape: f32[4,32], index: 1, kind: input, shape index: {}]   ;;  %s765_s2 = inlined_call_operand.vmem [shape: f32[4,4], index: 2, kind: input, shape index: {}]   ;;  %s766_s3 = inlined_call_operand.vmem [shape: f32[4,4], index: 3, kind: input, shape index: {}]   ;;  %s767_s4 = inlined_call_operand.vmem [shape: f32[4,4], index: 4, kind: input, shape index: {}]   ;;  %s768_s5 = inlined_call_operand.hbm [shape: f32[4,32], index: 5, kind: output, shape index: {}]  }
   0x1   :  { %11 = vsyncpa [#allocation3], 0 }
   0x2   :  { %12 = vsyncpa [#allocation4], 0  ;;  %s567_s20 = scalar_lea.hbm %s763_s0, 16 }
   0x3   :  { %p568_p0 = scmp.ne.s32.totalorder %s763_s0, %s567_s20  ;;  %p571_p1 = scmp.lt.u32.totalorder %s567_s20, %s763_s0 }
   0x5   :  { %p573_p2 = pnand %p571_p1, %p568_p0 }
   0x7   :  { %576 = shalt.err (!%p573_p2)
}
   0x8   :  { %s627_s25 = smov [#allocation2]   ;;  %s628_s28 = smov [#allocation6]  }
   0x9   :  { %20 = dma.hbm_to_smem %s763_s0, 16, %s627_s25, [#allocation5]  }
   0xa   :  { %s27_s29 = sshll.u32 %s628_s28, 4  ;;  %s577_s7 = scalar_lea.hbm %s764_s1, 64  ;;  %s28_s29 = int_to_ptr.vmem [resolvable:$true] %s27_s29 }
   0xb   :  { %p578_p3 = scmp.ne.s32.totalorder %s764_s1, %s577_s7  ;;  %p581_p4 = scmp.lt.u32.totalorder %s577_s7, %s764_s1 }
   0xd   :  { %p583_p5 = pnand %p581_p4, %p578_p3 }
   0xf   :  { %586 = shalt.err (!%p583_p5)
}
  0x10   :  { %s587_s12 = scalar_lea.vmem %s28_s29, 64  ;;  %p592_p7 = scmp.lt.s32.totalorder %s28_s29, %s28_s29 }
  0x11   :  { %p588_p6 = scmp.ne.s32.totalorder %s28_s29, %s587_s12  ;;  %p593_p8 = scmp.lt.s32.totalorder %s587_s12, %s587_s12 }
  0x13   :  { %p594_p9 = por %p593_p8, %p592_p7 }
  0x15   :  { %p595_p10 = pnand %p594_p9, %p588_p6 }
  0x17   :  { %598 = shalt.err (!%p595_p10)
}
  0x18   :  { %30 = dma.hbm_to_vmem [thread:$0]  %s764_s1, 64, %s28_s29, [#allocation3]  }
  0x19   :  { %621 = dma.done.wait [#allocation5], 16  }
  0x1a   :  { %622 = vsyncadd [#allocation5], 4294967280 }
  0x1b   :  { %623 = dma.done.wait [#allocation3], 64  }
  0x1c   :  { %624 = vsyncadd [#allocation3], 4294967232 }
  0x1d   :  { %43 = sfence }
  0x1e   :  { %v48_v0 = vld [vmem:[#allocation6] sm:$0xf]  ;;  %s629_s14 = smov 32   ;;  %vm57_vm0 = vcmask 1047808   ;;  %v630_v3 = vmov 0.0   ;;  %vm631_vm1 = vmmov 0   ;;  %v52_v6 = vlaneseq }
  0x1f   :  { %58 = vrot.lane.b32.xlu0 %v48_v0, %s629_s14  ;;  %527 = vmatprep.subr.mxu0 %v630_v3  ;;  %s632_s1 = smov 97   ;;  %s633_s15 = smov 127   ;;  %vm81_vm3 = vcmask 1043456   ;;  %v49_v10 = vld [vmem:[%s765_s2] sm:$0xf]  ;;  %vm77_vm4 = vcmask 31744  }
  0x20   :  { %542 = vmatprep.subr.mxu1 %v630_v3  ;;  %529 = vmatprep.mubr.msk.f32.mxu0 %vm631_vm1, %v630_v3  ;;  %v53_v7 = vand.u32 127, %v52_v6  ;;  %v50_v13 = vld [vmem:[%s766_s3] sm:$0xf]  ;;  %s44_s21 = sld [smem:[#allocation2]]  ;;  %s504_s22 = sld [smem:[#allocation2 + $0x1]]  ;;  %vm486_vm8 = vcmask 257024  }
  0x21   :  { %544 = vmatprep.mubr.msk.f32.mxu1 %vm631_vm1, %v630_v3  ;;  %v51_v15 = vld [vmem:[%s767_s4] sm:$0xf]  ;;  %s505_s3 = sld [smem:[#allocation2 + $0x2]]  ;;  %s506_s4 = sld [smem:[#allocation2 + $0x3]] }
  0x22   :  { %v701_v8 = vand.u32 15, %v53_v7  ;;  %s634_s23 = smov [#allocation7]  }
  0x23   :  { %s494_s24 = sshll.u32 %s634_s23, 4  ;;  %s495_s24 = int_to_ptr.vmem [resolvable:$true] %s494_s24 }
  0x24   :  { %vm55_vm2 = vcmp.eq.s32.totalorder %v701_v8, 0  ;;  %vm56_vm5 = vcmp.eq.s32.totalorder %v701_v8, 15  ;;  %vm313_vm6 = vcmp.eq.s32.totalorder %v701_v8, 1  ;;  %vm327_vm7 = vcmp.eq.s32.totalorder %v701_v8, 14  ;;  %s599_s25 = scalar_lea.vmem %s495_s24, 64  ;;  %p604_p12 = scmp.lt.s32.totalorder %s495_s24, %s495_s24 }
  0x25   :  { %p600_p11 = scmp.ne.s32.totalorder %s495_s24, %s599_s25  ;;  %p605_p13 = scmp.lt.s32.totalorder %s599_s25, %s599_s25 }
  0x26   :  { %v308_v16 = vstv %s504_s22  ;;  %v309_v17 = vstv %s44_s21 }
  0x27   :  { %v310_v18 = vsel %vm55_vm2, %v308_v16, %v309_v17  ;;  %v482_v33 = vstv %s505_s3  ;;  %v484_v36 = vstv %s506_s4  ;;  %p606_p0 = por %p605_p13, %p604_p12 }
  0x29   :  { %p607_p1 = pnand %p606_p0, %p600_p11 }
  0x91   :  { %v59_v1 = vpop.permute.xlu0 %58 }
  0x92   :  { %v60_v2 = vsel %vm57_vm0, %v59_v1, %v48_v0 }
  0x93   :  { %61 = vrot.lane.b32.xlu0 %v60_v2, %s629_s14 }
 0x105   :  { %v62_v4 = vpop.permute.xlu0 %61 }
 0x106   :  { %v63_v5 = vsel %vm57_vm0, %v62_v4, %v48_v0 }
 0x107   :  { %67 = vrot.lane.b32.xlu1 %v63_v5, %s632_s1 }
 0x10b   :  { %73 = vrot.lane.b32.xlu1 %v63_v5, %s633_s15 }
 0x179   :  { %v68_v9 = vpop.permute.xlu1 %67 }
 0x17a   :  { %v70_v11 = vsel %vm55_vm2, 0.0, %v68_v9 }
 0x17b   :  { %528 = vmatpush3.msk.msra.mxu0 %vm81_vm3, %v70_v11 }
 0x17c   :  { %530 = vmatmul.mubr.msk.f32.vlgmr.msra.gmra.mrb[0].mxu0 %vm77_vm4, %v49_v10  ;;  %532 = vmatprep.subr.mxu0 %v630_v3 }
 0x17d   :  { %533 = vmatpush3.msk.msra.mxu0 %vm81_vm3, %v48_v0  ;;  %534 = vmatprep.mubr.msk.f32.mxu0 %vm631_vm1, %v630_v3  ;;  %v74_v12 = vpop.permute.xlu1 %73 }
 0x17e   :  { %537 = vmatprep.subr.mxu0 %v630_v3  ;;  %v76_v14 = vsel %vm56_vm5, 0.0, %v74_v12 }
 0x184   :  { %535 = vmatmul.mubr.msk.f32.vlgmr.msra.gmra.mrb[0].mxu0 %vm77_vm4, %v50_v13 }
 0x185   :  { %538 = vmatpush3.msk.msra.mxu0 %vm81_vm3, %v76_v14  ;;  %539 = vmatprep.mubr.msk.f32.mxu0 %vm631_vm1, %v630_v3 }
 0x18c   :  { %540 = vmatmul.mubr.msk.f32.vlgmr.msra.gmra.mrb[0].mxu0 %vm77_vm4, %v51_v15 }
 0x25f   :  { %v303_v19 = vpop.f32.mrb[0].mxu0 }
 0x260   :  { %v311_v20 = vmul.f32 %v310_v18, %v303_v19  ;;  %v541_v21 = vpop.f32.mrb[1].mxu0  ;;  %v307_v31 = vadd.f32 nan, %v303_v19 }
 0x262   :  { %v312_v22 = vsub.f32 %v48_v0, %v311_v20 }
 0x264   :  { %314 = vrot.lane.b32.xlu0 %v312_v22, %s629_s14 }
 0x2d6   :  { %v315_v23 = vpop.permute.xlu0 %314 }
 0x2d7   :  { %v316_v24 = vsel %vm57_vm0, %v315_v23, %v312_v22 }
 0x2d8   :  { %317 = vrot.lane.b32.xlu1 %v316_v24, %s629_s14 }
 0x34a   :  { %v318_v25 = vpop.permute.xlu1 %317 }
 0x34b   :  { %v319_v26 = vsel %vm57_vm0, %v318_v25, %v312_v22 }
 0x34c   :  { %330 = vrot.lane.b32.xlu1 %v319_v26, %s633_s15  ;;  %323 = vrot.lane.b32.xlu0 %v319_v26, %s632_s1 }
 0x3be   :  { %v331_v27 = vpop.permute.xlu1 %330  ;;  %v324_v28 = vpop.permute.xlu0 %323 }
 0x3bf   :  { %v326_v29 = vsel %vm313_vm6, %v324_v28, 0.0  ;;  %v333_v30 = vsel %vm327_vm7, %v331_v27, 0.0 }
 0x3c0   :  { %543 = vmatpush3.msk.msra.mxu1 %vm81_vm3, %v326_v29 }
 0x3c1   :  { %545 = vmatmul.mubr.msk.f32.vlgmr.msra.gmra.mrb[0].mxu1 %vm77_vm4, %v49_v10  ;;  %547 = vmatprep.subr.mxu1 %v630_v3 }
 0x3c2   :  { %548 = vmatpush3.msk.msra.mxu1 %vm81_vm3, %v333_v30  ;;  %549 = vmatprep.mubr.msk.f32.mxu1 %vm631_vm1, %v630_v3 }
 0x3c9   :  { %550 = vmatmul.mubr.msk.f32.vlgmr.msra.gmra.mrb[0].mxu1 %vm77_vm4, %v51_v15 }
 0x49c   :  { %v477_v32 = vpop.f32.mrb[0].mxu1 }
 0x49d   :  { %v481_v34 = vadd.f32 %v477_v32, %v307_v31  ;;  %v551_v35 = vpop.f32.mrb[1].mxu1 }
 0x49f   :  { %v483_v37 = vsel %vm55_vm2, %v482_v33, %v481_v34 }
 0x4a0   :  { %v485_v38 = vsel %vm56_vm5, %v484_v36, %v483_v37 }
 0x4a1   :  { %487 = vst.msk [vmem:[#allocation7] sm:$0xf] %vm486_vm8, %v485_v38 }
 0x4a2   :  { %610 = shalt.err (!%p607_p1)
}
 0x4a3   :  { %s611_s28 = scalar_lea.hbm %s768_s5, 64 }
 0x4a4   :  { %p612_p2 = scmp.ne.s32.totalorder %s768_s5, %s611_s28  ;;  %p615_p3 = scmp.lt.u32.totalorder %s611_s28, %s768_s5 }
 0x4a6   :  { %p617_p4 = pnand %p615_p3, %p612_p2 }
 0x4a8   :  { %620 = shalt.err (!%p617_p4)
}
 0x4a9   :  { %497 = dma.vmem_to_hbm [thread:$0]  %s495_s24, 64, %s768_s5, [#allocation4]  }
 0x4aa   :  { %625 = dma.done.wait [#allocation4], 64  }
 0x4ab   :  { %626 = vsyncadd [#allocation4], 4294967232 }
 0x4ac   :  { %501 = vsyncpa [#allocation3], 1 }
 0x4ad   :  { %502 = vsyncpa [#allocation4], 1 }
 0x4ae   :  { %503 = vsyncpa [#allocation5], 1 }

</bundles_post_ra>
